<compile_context>
chip_gen: v5e
topology: v5e:2x2
jax: 0.10.0
libtpu: 0.0.40
codegen_flags: <defaults>
</compile_context>

<pallas_src>
import functools

import jax
import jax.numpy as jnp
from jax.experimental import pallas as pl
from jax.experimental.pallas import tpu as pltpu


def _round_up(x, m):
    return ((x + m - 1) // m) * m


def _cdiv(a, b):
    return (a + b - 1) // b


def mlp_kernel(x_ref, w1_ref, b1_ref, w2_ref, b2_ref, w3_ref, b3_ref, o_ref):
    """Fused 3-layer MLP on one (TB, input_dim) batch tile; weights stay VMEM-resident."""
    # fc1 + ReLU  (f32 accumulation regardless of weight dtype; biases are f32)
    h = jnp.dot(x_ref[...], w1_ref[...], preferred_element_type=jnp.float32)
    h = jnp.maximum(h + b1_ref[...], 0.0).astype(w2_ref.dtype)
    # fc2 + ReLU
    h = jnp.dot(h, w2_ref[...], preferred_element_type=jnp.float32)
    h = jnp.maximum(h + b2_ref[...], 0.0).astype(w3_ref.dtype)
    # fc3 (no activation)
    out = jnp.dot(h, w3_ref[...], preferred_element_type=jnp.float32) + b3_ref[...]
    o_ref[...] = out.astype(o_ref.dtype)


def prepare_base_network_params(w1, b1, w2, b2, w3, b3, *, dtype=jnp.float32):
    """One-time packing of parameters for the kernel (call once, off the hot path).

    Weights are stored (in_features, out_features), biases (1, out_features). The hidden
    dimension is zero-padded to a multiple of 128 here. Zero-padded hidden columns stay
    exactly zero through bias-add + ReLU and meet zero-padded rows of the next weight,
    so results match unpadded math exactly.
    """
    input_dim, hidden_dim = w1.shape
    latent_dim = w3.shape[1]
    hp = _round_up(hidden_dim, 128)
    f32 = jnp.float32

    w1p = jnp.zeros((input_dim, hp), dtype).at[:, :hidden_dim].set(w1.astype(dtype))
    w2p = jnp.zeros((hp, hp), dtype).at[:hidden_dim, :hidden_dim].set(w2.astype(dtype))
    w3p = jnp.zeros((hp, latent_dim), dtype).at[:hidden_dim, :].set(w3.astype(dtype))
    # biases stay f32: bias-add + ReLU run in f32 even with bf16 MXU inputs
    b1p = jnp.zeros((1, hp), f32).at[:, :hidden_dim].set(b1.reshape(1, -1).astype(f32))
    b2p = jnp.zeros((1, hp), f32).at[:, :hidden_dim].set(b2.reshape(1, -1).astype(f32))
    b3p = b3.reshape(1, -1).astype(f32)
    return (w1p, b1p, w2p, b2p, w3p, b3p)


@functools.partial(jax.jit, static_argnames=("tb",))
def base_network_forward(x, params, *, tb=1024):
    """y = relu(x@W1+b1); y = relu(y@W2+b2); y = y@W3+b3  (params from prepare_base_network_params)."""
    w1p, b1p, w2p, b2p, w3p, b3p = params
    input_dim, hp = w1p.shape
    latent_dim = w3p.shape[1]

    batch_shape = x.shape[:-1]
    x2 = x.reshape(-1, input_dim).astype(w1p.dtype)  # no-op when dtypes already match
    B = x2.shape[0]

    # Batch tile: multiple of 8 sublanes, at most `tb` rows.
    tb = max(8, (int(tb) // 8) * 8)
    TB = min(tb, _round_up(B, 8))
    # Ensure >= 2 grid steps for moderate/large batches so both v7x TensorCores get work.
    if B >= 128 and _cdiv(B, TB) < 2:
        TB = _round_up(_cdiv(B, 2), 8)
    grid = (_cdiv(B, TB),)  # partial last block (if any) is masked by Pallas

    # Explicit VMEM limit (v5e's default scoped VMEM is 16 MiB) + scheduler cost hint.
    w_bytes = sum(int(a.size) * a.dtype.itemsize for a in (w1p, b1p, w2p, b2p, w3p, b3p))
    act_bytes = 2 * TB * (input_dim * x2.dtype.itemsize + latent_dim * 4)  # dbl-buffered tiles
    h_bytes = 2 * TB * hp * 4                                              # h1/h2 intermediates
    vmem_limit = min(64 * 1024 * 1024,
                     max(32 * 1024 * 1024, int(1.5 * (2 * w_bytes + act_bytes + h_bytes))))
    cost = pl.CostEstimate(
        flops=2 * B * (input_dim * hp + hp * hp + hp * latent_dim),
        transcendentals=0,
        bytes_accessed=int(x2.size) * x2.dtype.itemsize + w_bytes + B * latent_dim * 4,
    )

    out = pl.pallas_call(
        mlp_kernel,
        out_shape=jax.ShapeDtypeStruct((B, latent_dim), jnp.float32),
        grid=grid,
        in_specs=[
            pl.BlockSpec((TB, input_dim), lambda i: (i, 0)),   # x tile, pipelined over batch
            pl.BlockSpec((input_dim, hp), lambda i: (0, 0)),   # W1 (VMEM-resident)
            pl.BlockSpec((1, hp), lambda i: (0, 0)),           # b1
            pl.BlockSpec((hp, hp), lambda i: (0, 0)),          # W2
            pl.BlockSpec((1, hp), lambda i: (0, 0)),           # b2
            pl.BlockSpec((hp, latent_dim), lambda i: (0, 0)),  # W3
            pl.BlockSpec((1, latent_dim), lambda i: (0, 0)),   # b3
        ],
        out_specs=pl.BlockSpec((TB, latent_dim), lambda i: (i, 0)),
        compiler_params=pltpu.CompilerParams(
            dimension_semantics=("parallel",),
            vmem_limit_bytes=vmem_limit,
        ),
        cost_estimate=cost,
    )(x2, w1p, b1p, w2p, b2p, w3p, b3p)

    return out.reshape(*batch_shape, latent_dim)


if __name__ == "__main__":
    input_dim, hidden_dim, latent_dim = 16, 32, 8

    key = jax.random.PRNGKey(0)
    kx, kx2, k1, k2, k3 = jax.random.split(key, 5)

    def init_linear(k, fan_in, fan_out):
        # mimic torch.nn.Linear default init (uniform +-1/sqrt(fan_in))
        kw, kb = jax.random.split(k)
        bound = 1.0 / (fan_in ** 0.5)
        w = jax.random.uniform(kw, (fan_in, fan_out), jnp.float32, -bound, bound)
        b = jax.random.uniform(kb, (fan_out,), jnp.float32, -bound, bound)
        return w, b

    w1, b1 = init_linear(k1, input_dim, hidden_dim)
    w2, b2 = init_linear(k2, hidden_dim, hidden_dim)
    w3, b3 = init_linear(k3, hidden_dim, latent_dim)

    # One-time packing/padding of parameters (hoisted out of the per-call path).
    params = prepare_base_network_params(w1, b1, w2, b2, w3, b3)

    def ref_forward(xx):
        h = jnp.maximum(xx @ w1 + b1, 0.0)
        h = jnp.maximum(h @ w2 + b2, 0.0)
        return h @ w3 + b3

    # aligned small batch
    x_a = jax.random.normal(kx, (8, input_dim), dtype=jnp.float32)
    out_a = jax.block_until_ready(base_network_forward(x_a, params))
    assert out_a.shape == (8, latent_dim)
    assert jnp.allclose(out_a, ref_forward(x_a), atol=1e-5, rtol=1e-5)

    # batch that is not a multiple of 8 (exercises the masked partial last block)
    x_b = jax.random.normal(kx2, (13, input_dim), dtype=jnp.float32)
    out_b = jax.block_until_ready(base_network_forward(x_b, params))
    assert out_b.shape == (13, latent_dim)
    assert jnp.allclose(out_b, ref_forward(x_b), atol=1e-5, rtol=1e-5)

    print("KERNEL_OK")
</pallas_src>

<mosaic_0001>
module attributes {stable_mosaic.version = 11 : i64} {
  func.func @mlp_kernel(%arg0: i32, %arg1: memref<8x16xf32, #tpu.memory_space<vmem>>, %arg2: memref<16x128xf32, #tpu.memory_space<vmem>>, %arg3: memref<1x128xf32, #tpu.memory_space<vmem>>, %arg4: memref<128x128xf32, #tpu.memory_space<vmem>>, %arg5: memref<1x128xf32, #tpu.memory_space<vmem>>, %arg6: memref<128x8xf32, #tpu.memory_space<vmem>>, %arg7: memref<1x8xf32, #tpu.memory_space<vmem>>, %arg8: memref<8x8xf32, #tpu.memory_space<vmem>>) attributes {dimension_semantics = [#tpu.dimension_semantics<parallel>], iteration_bounds = array<i64: 1>, scalar_prefetch = 0 : i64, scratch_operands = 0 : i64, tpu.core_type = #tpu.core_type<tc>, window_params = [{transform_indices = @transform_0, window_bounds = array<i64: 8, 16>}, {pipeline_mode = #tpu.pipeline_mode<synchronous>, transform_indices = @transform_1, window_bounds = array<i64: 16, 128>}, {pipeline_mode = #tpu.pipeline_mode<synchronous>, transform_indices = @transform_2, window_bounds = array<i64: 1, 128>}, {pipeline_mode = #tpu.pipeline_mode<synchronous>, transform_indices = @transform_3, window_bounds = array<i64: 128, 128>}, {pipeline_mode = #tpu.pipeline_mode<synchronous>, transform_indices = @transform_4, window_bounds = array<i64: 1, 128>}, {pipeline_mode = #tpu.pipeline_mode<synchronous>, transform_indices = @transform_5, window_bounds = array<i64: 128, 8>}, {pipeline_mode = #tpu.pipeline_mode<synchronous>, transform_indices = @transform_6, window_bounds = array<i64: 1, 8>}, {transform_indices = @transform_7, window_bounds = array<i64: 8, 8>}]} {
    %c0 = arith.constant 0 : index
    %c0_0 = arith.constant 0 : index
    %0 = vector.load %arg1[%c0, %c0_0] : memref<8x16xf32, #tpu.memory_space<vmem>>, vector<8x16xf32>
    %c0_1 = arith.constant 0 : index
    %c0_2 = arith.constant 0 : index
    %1 = vector.load %arg2[%c0_1, %c0_2] : memref<16x128xf32, #tpu.memory_space<vmem>>, vector<16x128xf32>
    %cst = arith.constant dense<0.000000e+00> : vector<8x128xf32>
    %2 = tpu.matmul %0, %1, %cst {dimension_numbers = #tpu.dot_dimension_numbers<[1], [0], [0], [1], [0, 0, 1, 1], [], []>} : vector<8x16xf32>, vector<16x128xf32>, vector<8x128xf32> -> vector<8x128xf32>
    %c0_3 = arith.constant 0 : index
    %c0_4 = arith.constant 0 : index
    %3 = vector.load %arg3[%c0_3, %c0_4] : memref<1x128xf32, #tpu.memory_space<vmem>>, vector<1x128xf32>
    %4 = vector.broadcast %3 : vector<1x128xf32> to vector<8x128xf32>
    %5 = arith.addf %2, %4 : vector<8x128xf32>
    %cst_5 = arith.constant 0.000000e+00 : f32
    %6 = vector.broadcast %cst_5 : f32 to vector<8x128xf32>
    %7 = arith.maximumf %5, %6 : vector<8x128xf32>
    %c0_6 = arith.constant 0 : index
    %c0_7 = arith.constant 0 : index
    %8 = vector.load %arg4[%c0_6, %c0_7] : memref<128x128xf32, #tpu.memory_space<vmem>>, vector<128x128xf32>
    %cst_8 = arith.constant dense<0.000000e+00> : vector<8x128xf32>
    %9 = tpu.matmul %7, %8, %cst_8 {dimension_numbers = #tpu.dot_dimension_numbers<[1], [0], [0], [1], [0, 0, 1, 1], [], []>} : vector<8x128xf32>, vector<128x128xf32>, vector<8x128xf32> -> vector<8x128xf32>
    %c0_9 = arith.constant 0 : index
    %c0_10 = arith.constant 0 : index
    %10 = vector.load %arg5[%c0_9, %c0_10] : memref<1x128xf32, #tpu.memory_space<vmem>>, vector<1x128xf32>
    %11 = vector.broadcast %10 : vector<1x128xf32> to vector<8x128xf32>
    %12 = arith.addf %9, %11 : vector<8x128xf32>
    %cst_11 = arith.constant 0.000000e+00 : f32
    %13 = vector.broadcast %cst_11 : f32 to vector<8x128xf32>
    %14 = arith.maximumf %12, %13 : vector<8x128xf32>
    %c0_12 = arith.constant 0 : index
    %c0_13 = arith.constant 0 : index
    %15 = vector.load %arg6[%c0_12, %c0_13] : memref<128x8xf32, #tpu.memory_space<vmem>>, vector<128x8xf32>
    %cst_14 = arith.constant dense<0.000000e+00> : vector<8x8xf32>
    %16 = tpu.matmul %14, %15, %cst_14 {dimension_numbers = #tpu.dot_dimension_numbers<[1], [0], [0], [1], [0, 0, 1, 1], [], []>} : vector<8x128xf32>, vector<128x8xf32>, vector<8x8xf32> -> vector<8x8xf32>
    %c0_15 = arith.constant 0 : index
    %c0_16 = arith.constant 0 : index
    %17 = vector.load %arg7[%c0_15, %c0_16] : memref<1x8xf32, #tpu.memory_space<vmem>>, vector<1x8xf32>
    %18 = vector.broadcast %17 : vector<1x8xf32> to vector<8x8xf32>
    %19 = arith.addf %16, %18 : vector<8x8xf32>
    %c0_17 = arith.constant 0 : index
    %c0_18 = arith.constant 0 : index
    %20 = vector.load %arg8[%c0_17, %c0_18] : memref<8x8xf32, #tpu.memory_space<vmem>>, vector<8x8xf32>
    tpu.vector_store %arg8[%c0_17, %c0_18], %19 {strides = array<i32>} : memref<8x8xf32, #tpu.memory_space<vmem>>, vector<8x8xf32>,
    return
  }
  func.func @transform_0(%arg0: i32) -> (i32, i32) {
    %c0_i32 = arith.constant 0 : i32
    %c0_i32_0 = arith.constant 0 : i32
    return %arg0, %c0_i32 : i32, i32
  }
  func.func @transform_1(%arg0: i32) -> (i32, i32) {
    %c0_i32 = arith.constant 0 : i32
    %c0_i32_0 = arith.constant 0 : i32
    %c0_i32_1 = arith.constant 0 : i32
    return %c0_i32, %c0_i32_0 : i32, i32
  }
  func.func @transform_2(%arg0: i32) -> (i32, i32) {
    %c0_i32 = arith.constant 0 : i32
    %c0_i32_0 = arith.constant 0 : i32
    %c0_i32_1 = arith.constant 0 : i32
    return %c0_i32, %c0_i32_0 : i32, i32
  }
  func.func @transform_3(%arg0: i32) -> (i32, i32) {
    %c0_i32 = arith.constant 0 : i32
    %c0_i32_0 = arith.constant 0 : i32
    %c0_i32_1 = arith.constant 0 : i32
    return %c0_i32, %c0_i32_0 : i32, i32
  }
  func.func @transform_4(%arg0: i32) -> (i32, i32) {
    %c0_i32 = arith.constant 0 : i32
    %c0_i32_0 = arith.constant 0 : i32
    %c0_i32_1 = arith.constant 0 : i32
    return %c0_i32, %c0_i32_0 : i32, i32
  }
  func.func @transform_5(%arg0: i32) -> (i32, i32) {
    %c0_i32 = arith.constant 0 : i32
    %c0_i32_0 = arith.constant 0 : i32
    %c0_i32_1 = arith.constant 0 : i32
    return %c0_i32, %c0_i32_0 : i32, i32
  }
  func.func @transform_6(%arg0: i32) -> (i32, i32) {
    %c0_i32 = arith.constant 0 : i32
    %c0_i32_0 = arith.constant 0 : i32
    %c0_i32_1 = arith.constant 0 : i32
    return %c0_i32, %c0_i32_0 : i32, i32
  }
  func.func @transform_7(%arg0: i32) -> (i32, i32) {
    %c0_i32 = arith.constant 0 : i32
    %c0_i32_0 = arith.constant 0 : i32
    return %arg0, %c0_i32 : i32, i32
  }
}

</mosaic_0001>

<bundles_post_ra>
// kernel: base_network_forward.1
= control target key start
LH: loop header
LB: loop body
LE: loop exit
PB: predicated region body
PF: predicated region fallthrough
CT: control target
= control target key end

     0   :  { %12 = vsyncpa [#allocation3], 0  ;;  %s393_s0 = inlined_call_operand.vmem [shape: f32[8,16], index: 0, kind: input, shape index: {}]   ;;  %s394_s1 = inlined_call_operand.hbm [shape: f32[16,128], index: 1, kind: input, shape index: {}]   ;;  %s395_s2 = inlined_call_operand.vmem [shape: f32[1,128], index: 2, kind: input, shape index: {}]   ;;  %s396_s3 = inlined_call_operand.vmem [shape: f32[128,128], index: 3, kind: input, shape index: {}]   ;;  %s397_s4 = inlined_call_operand.vmem [shape: f32[1,128], index: 4, kind: input, shape index: {}]   ;;  %s398_s5 = inlined_call_operand.vmem [shape: f32[128,8], index: 5, kind: input, shape index: {}]   ;;  %s399_s6 = inlined_call_operand.vmem [shape: f32[1,8], index: 6, kind: input, shape index: {}]   ;;  %s400_s7 = inlined_call_operand.hbm [shape: f32[8,8], index: 7, kind: output, shape index: {}]  }
   0x1   :  { %13 = vsyncpa [#allocation4], 0  ;;  %s20_s26 = sshll.u32 %s394_s1, 4  ;;  %s235_s27 = smov [#allocation2]   ;;  %s21_s26 = int_to_ptr.hbm [resolvable:$true] %s20_s26 }
   0x2   :  { %s22_s28 = sshll.u32 %s235_s27, 4  ;;  %s236_s29 = smov 128   ;;  %s23_s28 = int_to_ptr.vmem [resolvable:$true] %s22_s28 }
   0x3   :  { %s237_s30 = smov 8  }
   0x4   :  { %28 = dma.hbm_to_vmem [thread:$0]  %s21_s26, 256, %s23_s28, [#allocation3], %s236_s29, %s236_s29, %s237_s30  }
   0x5   :  { %231 = dma.done.wait [#allocation3], 256  }
   0x6   :  { %232 = vsyncadd [#allocation3], 4294967040  ;;  %v45_v0 = vld [vmem:[#allocation2 + $0x8] sm:$0xff]  ;;  %v44_v1 = vld [vmem:[#allocation2] sm:$0xff]  ;;  %vm50_vm0 = vcmask 130048   ;;  %s238_s25 = smov [#allocation5]  }
   0x7   :  { %68 = vmatpush.msra.mxu0 %v45_v0  ;;  %v43_v2 = vld [vmem:[%s393_s0] sm:$0xff]  ;;  %v90_v3 = vld [vmem:[%s396_s3 + $0x78] sm:$0xff]  ;;  %v89_v4 = vld [vmem:[%s396_s3 + $0x70] sm:$0xff]  ;;  %s163_s26 = sshll.u32 %s238_s25, 4  ;;  %s165_s29 = sshll.u32 %s400_s7, 4  ;;  %vm156_vm1 = vcmask 64512   ;;  %s164_s26 = int_to_ptr.vmem [resolvable:$true] %s163_s26  ;;  %s166_s29 = int_to_ptr.hbm [resolvable:$true] %s165_s29 }
   0x8   :  { %95 = vmatpush.msra.mxu1 %v90_v3  ;;  %v88_v5 = vld [vmem:[%s396_s3 + $0x68] sm:$0xff]  ;;  %v87_v6 = vld [vmem:[%s396_s3 + $0x60] sm:$0xff]  ;;  %v86_v7 = vld [vmem:[%s396_s3 + $0x58] sm:$0xff] }
   0x9   :  { %69 = vmatpush.msra.mxu0 %v44_v1  ;;  %v85_v8 = vld [vmem:[%s396_s3 + $0x50] sm:$0xff]  ;;  %v84_v9 = vld [vmem:[%s396_s3 + $0x48] sm:$0xff]  ;;  %v83_v10 = vld [vmem:[%s396_s3 + $0x40] sm:$0xff] }
   0xa   :  { %175 = vmatmul.msk.f32.vlgmr.msra.gmra.mxu0 %vm50_vm0, %v43_v2  ;;  %96 = vmatpush.msra.mxu1 %v89_v4  ;;  %v82_v11 = vld [vmem:[%s396_s3 + $0x38] sm:$0xff]  ;;  %v81_v12 = vld [vmem:[%s396_s3 + $0x30] sm:$0xff]  ;;  %v80_v13 = vld [vmem:[%s396_s3 + $0x28] sm:$0xff] }
   0xb   :  { %v79_v14 = vld [vmem:[%s396_s3 + $0x20] sm:$0xff]  ;;  %v78_v15 = vld [vmem:[%s396_s3 + $0x18] sm:$0xff]  ;;  %v77_v16 = vld [vmem:[%s396_s3 + $0x10] sm:$0xff] }
   0xc   :  { %97 = vmatpush.msra.mxu1 %v88_v5  ;;  %v76_v17 = vld [vmem:[%s396_s3 + $0x8] sm:$0xff]  ;;  %v75_v18 = vld [vmem:[%s396_s3] sm:$0xff]  ;;  %v131_v19 = vld [vmem:[%s398_s5 + $0x78] sm:$0xff] }
   0xd   :  { %v130_v20 = vld [vmem:[%s398_s5 + $0x70] sm:$0xff]  ;;  %136 = vmatpush.msra.mxu2 %v131_v19  ;;  %v129_v21 = vld [vmem:[%s398_s5 + $0x68] sm:$0xff]  ;;  %v128_v22 = vld [vmem:[%s398_s5 + $0x60] sm:$0xff] }
   0xe   :  { %98 = vmatpush.msra.mxu1 %v87_v6  ;;  %v127_v23 = vld [vmem:[%s398_s5 + $0x58] sm:$0xff]  ;;  %v126_v24 = vld [vmem:[%s398_s5 + $0x50] sm:$0xff]  ;;  %v125_v25 = vld [vmem:[%s398_s5 + $0x48] sm:$0xff] }
   0xf   :  { %137 = vmatpush.msra.mxu2 %v130_v20  ;;  %v124_v26 = vld [vmem:[%s398_s5 + $0x40] sm:$0xff]  ;;  %v123_v27 = vld [vmem:[%s398_s5 + $0x38] sm:$0xff]  ;;  %v122_v28 = vld [vmem:[%s398_s5 + $0x30] sm:$0xff] }
  0x10   :  { %99 = vmatpush.msra.mxu1 %v86_v7  ;;  %v121_v29 = vld [vmem:[%s398_s5 + $0x28] sm:$0xff]  ;;  %v120_v30 = vld [vmem:[%s398_s5 + $0x20] sm:$0xff]  ;;  %v119_v31 = vld [vmem:[%s398_s5 + $0x18] sm:$0xff] }
  0x11   :  { %138 = vmatpush.msra.mxu2 %v129_v21  ;;  %v180_v32 = vld [vmem:[%s395_s2] ss:$0 sm:$0xff]  ;;  %v118_v36 = vld [vmem:[%s398_s5 + $0x10] sm:$0xff]  ;;  %v117_v37 = vld [vmem:[%s398_s5 + $0x8] sm:$0xff] }
  0x12   :  { %100 = vmatpush.msra.mxu1 %v85_v8  ;;  %v116_v38 = vld [vmem:[%s398_s5] sm:$0xff] }
  0x13   :  { %139 = vmatpush.msra.mxu2 %v128_v22  ;;  %v181_v39 = vld [vmem:[%s397_s4] ss:$0 sm:$0xff] }
  0x14   :  { %101 = vmatpush.msra.mxu1 %v84_v9  ;;  %v182_v43 = vld [vmem:[%s399_s6] ss:$0 sm:$0xff] }
  0x15   :  { %140 = vmatpush.msra.mxu2 %v127_v23 }
  0x16   :  { %102 = vmatpush.msra.mxu1 %v83_v10 }
  0x17   :  { %141 = vmatpush.msra.mxu2 %v126_v24 }
  0x18   :  { %103 = vmatpush.msra.mxu1 %v82_v11 }
  0x19   :  { %142 = vmatpush.msra.mxu2 %v125_v25 }
  0x1a   :  { %104 = vmatpush.msra.mxu1 %v81_v12 }
  0x1b   :  { %143 = vmatpush.msra.mxu2 %v124_v26 }
  0x1c   :  { %105 = vmatpush.msra.mxu1 %v80_v13 }
  0x1d   :  { %144 = vmatpush.msra.mxu2 %v123_v27 }
  0x1e   :  { %106 = vmatpush.msra.mxu1 %v79_v14 }
  0x1f   :  { %145 = vmatpush.msra.mxu2 %v122_v28 }
  0x20   :  { %107 = vmatpush.msra.mxu1 %v78_v15 }
  0x21   :  { %146 = vmatpush.msra.mxu2 %v121_v29 }
  0x22   :  { %108 = vmatpush.msra.mxu1 %v77_v16 }
  0x23   :  { %147 = vmatpush.msra.mxu2 %v120_v30 }
  0x24   :  { %109 = vmatpush.msra.mxu1 %v76_v17 }
  0x25   :  { %148 = vmatpush.msra.mxu2 %v119_v31 }
  0x26   :  { %110 = vmatpush.msra.mxu1 %v75_v18 }
  0x27   :  { %149 = vmatpush.msra.mxu2 %v118_v36 }
  0x29   :  { %150 = vmatpush.msra.mxu2 %v117_v37 }
  0x2b   :  { %151 = vmatpush.msra.mxu2 %v116_v38 }
  0x87   :  { %v71_v33 = vpop.f32.mrf.mxu0 }
  0x88   :  { %v72_v34 = vadd.f32 %v180_v32, %v71_v33 }
  0x8a   :  { %v74_v35 = vmax.f32 %v72_v34, 0.0 }
  0x8c   :  { %111 = vmatmul.f32.vlgmr.msra.gmra.mxu1 %v74_v35 }
 0x109   :  { %v112_v40 = vpop.f32.mrf.mxu1 }
 0x10a   :  { %v113_v41 = vadd.f32 %v181_v39, %v112_v40 }
 0x10c   :  { %v115_v42 = vmax.f32 %v113_v41, 0.0 }
 0x10e   :  { %152 = vmatmul.f32.vlgmr.msra.gmra.mxu2 %v115_v42 }
 0x191   :  { %v153_v44 = vpop.f32.mrf.mxu2 }
 0x192   :  { %v154_v45 = vadd.f32 %v182_v43, %v153_v44 }
 0x194   :  { %157 = vst.msk [vmem:[#allocation5] sm:$0xff] %vm156_vm1, %v154_v45 }
 0x195   :  { %168 = dma.vmem_to_hbm [thread:$0]  %s164_s26, 128, %s166_s29, [#allocation4]  }
 0x196   :  { %233 = dma.done.wait [#allocation4], 128  }
 0x197   :  { %234 = vsyncadd [#allocation4], 4294967168 }
 0x198   :  { %173 = vsyncpa [#allocation3], 1 }
 0x199   :  { %174 = vsyncpa [#allocation4], 1 }

</bundles_post_ra>
